<compile_context>
chip_gen: v7x
topology: tpu7x:2x2x1
jax: 0.10.0
libtpu: 0.0.40
codegen_flags: <defaults>
</compile_context>

<pallas_src>
import functools

import jax
import jax.numpy as jnp
import numpy as np
from jax.experimental import pallas as pl
from jax.experimental.pallas import tpu as pltpu


def _ve_kernel(patches_ref, wc_ref, bc_ref, wh_ref, bh_ref, eps_ref, out_ref,
               *, latent, hw, b):
    """One grid step == one batch block of `b` images (M = b*hw pixels).

    patches_ref : (K_pad, M)          im2col patches, contraction on sublanes,
                                      pixels on lanes (lane-dense)
    wc_ref      : (latent, K_pad)     conv weights, tap-major columns
    bc_ref      : (latent, 1)         conv bias (column, broadcast over lanes)
    wh_ref      : (2*latent, latent)  fused [mu ; log_sigma] head weights
    bh_ref      : (2*latent, 1)       fused head biases
    eps_ref     : (1, latent, b)      standard-normal noise for this block
    out_ref     : (1, latent+1, b)    packed output: rows 0..latent-1 = sample,
                                      row latent = per-image KL partial
    """
    # Conv(3x3, pad=1) as a single matmul; output (latent, M) is lane-dense.
    acc = jnp.dot(wc_ref[...], patches_ref[...],
                  preferred_element_type=jnp.float32)            # (latent, M) f32
    act = jnp.tanh(acc + bc_ref[...])                            # (latent, M) f32

    # Per-image spatial mean: static, lane-aligned slices + XLU lane reduction.
    # No pooling matrix, no zero MACs, works for any (small) b.
    cols = [jnp.mean(act[:, i * hw:(i + 1) * hw], axis=1, keepdims=True)
            for i in range(b)]                                    # each (latent, 1)
    feat = cols[0] if b == 1 else jnp.concatenate(cols, axis=1)   # (latent, b)

    # Fused mu / log_sigma heads; split lands on a sublane multiple of 8 (free).
    heads = jnp.dot(wh_ref[...], feat,
                    preferred_element_type=jnp.float32) + bh_ref[...]  # (2L, b)
    mu = heads[:latent, :]
    log_sigma = heads[latent:, :]
    sigma = jnp.exp(log_sigma)

    res = mu + sigma * eps_ref[0]                                 # (latent, b)
    # Per-image KL partial (summed across images/blocks in the wrapper).
    # log(sigma) == log_sigma since sigma = exp(log_sigma).
    kl = jnp.sum(sigma * sigma + mu * mu - log_sigma - 0.5,
                 axis=0, keepdims=True)                           # (1, b)

    out_ref[0] = jnp.concatenate([res, kl], axis=0)               # (latent+1, b)


def dummy_ve_forward(x_nchw, params, eps, *, batch_block=1,
                     matmul_dtype=jnp.float32):
    """Returns (res, kl) matching DummyVE.forward (res) and the self.kl side effect."""
    N, Cin, H, W = x_nchw.shape
    latent = params["mu_b"].shape[0]
    B = N if batch_block is None else batch_block
    assert N % B == 0, "batch must be divisible by the batch block"
    num_blocks = N // B
    HW = H * W
    M = B * HW
    # Keep the streamed lane extent 128-aligned (and per-image slices aligned).
    assert M % 128 == 0 or num_blocks == 1, "per-step lane extent must be 128-aligned"
    assert B == 1 or HW % 128 == 0, "per-image lane slice must be 128-aligned when B>1"

    x = jnp.transpose(x_nchw, (0, 2, 3, 1)).astype(jnp.float32)   # NHWC
    xp = jnp.pad(x, ((0, 0), (1, 1), (1, 1), (0, 0)))             # padding=1

    # im2col, TRANSPOSED: (9*Cin, N*H*W) -> contraction on sublanes, pixels on lanes.
    taps = [xp[:, kh:kh + H, kw:kw + W, :] for kh in range(3) for kw in range(3)]
    patches_t = jnp.concatenate(taps, axis=-1).reshape(N * HW, 9 * Cin).T
    K = 9 * Cin
    K_pad = ((K + 31) // 32) * 32                                  # 27 -> 32
    patches_t = jnp.pad(patches_t, ((0, K_pad - K), (0, 0))).astype(matmul_dtype)

    # PyTorch conv weight (Cout, Cin, 3, 3) -> (Cout, kh, kw, Cin) -> (latent, 9*Cin),
    # columns zero-padded to the padded contraction dim (tap-major, matches patches).
    w_conv_t = jnp.transpose(params["conv_w"], (0, 2, 3, 1)).reshape(latent, K)
    w_conv_t = jnp.pad(w_conv_t, ((0, 0), (0, K_pad - K))).astype(matmul_dtype)
    b_conv = params["conv_b"].reshape(latent, 1).astype(jnp.float32)

    # Fused heads: PyTorch Linear weights are (out, in); transposed flow wants them
    # stacked on the output (sublane) axis: (2*latent, latent).
    w_heads = jnp.concatenate([params["mu_w"], params["sig_w"]],
                              axis=0).astype(jnp.float32)          # (2L, L)
    b_heads = jnp.concatenate([params["mu_b"], params["sig_b"]]
                              ).reshape(2 * latent, 1).astype(jnp.float32)

    # eps: (N, latent) -> (num_blocks, latent, B); lane b of block i is image i*B+b.
    eps_t = eps.astype(jnp.float32).reshape(num_blocks, B, latent).transpose(0, 2, 1)

    # VMEM budget derived from the actual buffers (v7x has only 64 MiB VMEM).
    itemsize = jnp.dtype(matmul_dtype).itemsize
    streamed = 2 * K_pad * M * itemsize                    # patches block, double-buffered
    residents = (latent * K_pad * itemsize                 # conv weights
                 + latent * 4                              # conv bias
                 + 2 * latent * latent * 4                 # head weights
                 + 2 * latent * 4                          # head bias
                 + 2 * latent * B * 4 * 2                  # eps block (double-buffered)
                 + 2 * (latent + 1) * B * 4 * 2)           # out block (double-buffered)
    work = 4 * latent * M * 4                              # act + intermediates headroom
    vmem_limit = int(min(max(streamed + residents + work + (4 << 20), 8 << 20),
                         64 << 20))

    kernel = functools.partial(_ve_kernel, latent=latent, hw=HW, b=B)
    out = pl.pallas_call(
        kernel,
        out_shape=jax.ShapeDtypeStruct((num_blocks, latent + 1, B), jnp.float32),
        grid=(num_blocks,),
        in_specs=[
            pl.BlockSpec((K_pad, M), lambda i: (0, i)),            # patches (streamed)
            pl.BlockSpec((latent, K_pad), lambda i: (0, 0)),       # conv W (invariant)
            pl.BlockSpec((latent, 1), lambda i: (0, 0)),           # conv b
            pl.BlockSpec((2 * latent, latent), lambda i: (0, 0)),  # fused head W
            pl.BlockSpec((2 * latent, 1), lambda i: (0, 0)),       # fused head b
            pl.BlockSpec((1, latent, B), lambda i: (i, 0, 0)),     # eps block
        ],
        out_specs=pl.BlockSpec((1, latent + 1, B), lambda i: (i, 0, 0)),
        compiler_params=pltpu.CompilerParams(
            dimension_semantics=("parallel",),   # per-block partials only -> megacore-safe
            vmem_limit_bytes=vmem_limit,
        ),
    )(patches_t, w_conv_t, b_conv, w_heads, b_heads, eps_t)

    res = out[:, :latent, :].transpose(0, 2, 1).reshape(N, latent)
    kl = jnp.sum(out[:, latent, :])
    return res, kl


def reference_forward(x_nchw, params, eps):
    """Pure-JAX reference mirroring the PyTorch forward."""
    x = jnp.transpose(x_nchw, (0, 2, 3, 1)).astype(jnp.float32)
    w_hwio = jnp.transpose(params["conv_w"], (2, 3, 1, 0))
    conv = jax.lax.conv_general_dilated(
        x, w_hwio, window_strides=(1, 1), padding="SAME",
        dimension_numbers=("NHWC", "HWIO", "NHWC"))
    act = jnp.tanh(conv + params["conv_b"])
    feat = act.mean(axis=(1, 2))                                   # (N, latent)
    mu = feat @ params["mu_w"].T + params["mu_b"]
    log_sigma = feat @ params["sig_w"].T + params["sig_b"]
    sigma = jnp.exp(log_sigma)
    res = mu + sigma * eps
    kl = jnp.sum(sigma ** 2 + mu ** 2 - log_sigma - 0.5)
    return res, kl


def init_params(key, latent):
    ks = jax.random.split(key, 6)
    return {
        "conv_w": 0.1 * jax.random.normal(ks[0], (latent, 3, 3, 3), jnp.float32),
        "conv_b": 0.1 * jax.random.normal(ks[1], (latent,), jnp.float32),
        "mu_w": 0.1 * jax.random.normal(ks[2], (latent, latent), jnp.float32),
        "mu_b": 0.1 * jax.random.normal(ks[3], (latent,), jnp.float32),
        "sig_w": 0.1 * jax.random.normal(ks[4], (latent, latent), jnp.float32),
        "sig_b": 0.1 * jax.random.normal(ks[5], (latent,), jnp.float32),
    }


if __name__ == "__main__":
    latent_size = 16
    N, Cin, H, W = 2, 3, 16, 16

    root = jax.random.PRNGKey(0)
    k_params, k_x, k_eps = jax.random.split(root, 3)
    params = init_params(k_params, latent_size)
    x = jax.random.normal(k_x, (N, Cin, H, W), jnp.float32)
    # TODO(synk): torch.distributions.Normal(0,1).sample() has no torch-RNG-tied
    # equivalent in-kernel; deterministic standard-normal noise is drawn here instead.
    eps = jax.random.normal(k_eps, (N, latent_size), jnp.float32)

    res_ref, kl_ref = reference_forward(x, params, eps)

    # f32 MXU operands (exact-parity path): one image per grid step -> 2 grid steps,
    # so v7x megacore actually gets both TensorCores.
    res, kl = dummy_ve_forward(x, params, eps, batch_block=1)
    res = jax.block_until_ready(res)
    kl = jax.block_until_ready(kl)
    np.testing.assert_allclose(np.asarray(res), np.asarray(res_ref), rtol=1e-3, atol=1e-4)
    np.testing.assert_allclose(float(kl), float(kl_ref), rtol=1e-3, atol=1e-3)

    # bf16 MXU operands (v6e/v7x-native matmul path); elementwise math stays f32.
    res16, kl16 = dummy_ve_forward(x, params, eps, batch_block=1,
                                   matmul_dtype=jnp.bfloat16)
    res16 = jax.block_until_ready(res16)
    kl16 = jax.block_until_ready(kl16)
    np.testing.assert_allclose(np.asarray(res16), np.asarray(res_ref), rtol=5e-2, atol=1e-2)
    np.testing.assert_allclose(float(kl16), float(kl_ref), rtol=5e-2, atol=5e-2)

    print("KERNEL_OK")
</pallas_src>

<mosaic_0001>
module attributes {stable_mosaic.version = 11 : i64} {
  func.func @_ve_kernel(%arg0: i32, %arg1: memref<32x256xf32, #tpu.memory_space<vmem>>, %arg2: memref<16x32xf32, #tpu.memory_space<vmem>>, %arg3: memref<16x1xf32, #tpu.memory_space<vmem>>, %arg4: memref<32x16xf32, #tpu.memory_space<vmem>>, %arg5: memref<32x1xf32, #tpu.memory_space<vmem>>, %arg6: memref<1x16x1xf32, #tpu.memory_space<vmem>>, %arg7: memref<1x17x1xf32, #tpu.memory_space<vmem>>) attributes {dimension_semantics = [#tpu.dimension_semantics<parallel>], iteration_bounds = array<i64: 2>, scalar_prefetch = 0 : i64, scratch_operands = 0 : i64, tpu.core_type = #tpu.core_type<tc>, window_params = [{transform_indices = @transform_0, window_bounds = array<i64: 32, 256>}, {pipeline_mode = #tpu.pipeline_mode<synchronous>, transform_indices = @transform_1, window_bounds = array<i64: 16, 32>}, {pipeline_mode = #tpu.pipeline_mode<synchronous>, transform_indices = @transform_2, window_bounds = array<i64: 16, 1>}, {pipeline_mode = #tpu.pipeline_mode<synchronous>, transform_indices = @transform_3, window_bounds = array<i64: 32, 16>}, {pipeline_mode = #tpu.pipeline_mode<synchronous>, transform_indices = @transform_4, window_bounds = array<i64: 32, 1>}, {transform_indices = @transform_5, window_bounds = array<i64: 1, 16, 1>}, {transform_indices = @transform_6, window_bounds = array<i64: 1, 17, 1>}]} {
    %c0 = arith.constant 0 : index
    %c0_0 = arith.constant 0 : index
    %0 = vector.load %arg2[%c0, %c0_0] : memref<16x32xf32, #tpu.memory_space<vmem>>, vector<16x32xf32>
    %c0_1 = arith.constant 0 : index
    %c0_2 = arith.constant 0 : index
    %1 = vector.load %arg1[%c0_1, %c0_2] : memref<32x256xf32, #tpu.memory_space<vmem>>, vector<32x256xf32>
    %cst = arith.constant dense<0.000000e+00> : vector<16x256xf32>
    %2 = tpu.matmul %0, %1, %cst {dimension_numbers = #tpu.dot_dimension_numbers<[1], [0], [0], [1], [0, 0, 1, 1], [], []>} : vector<16x32xf32>, vector<32x256xf32>, vector<16x256xf32> -> vector<16x256xf32>
    %c0_3 = arith.constant 0 : index
    %c0_4 = arith.constant 0 : index
    %3 = vector.load %arg3[%c0_3, %c0_4] : memref<16x1xf32, #tpu.memory_space<vmem>>, vector<16x1xf32>
    %4 = vector.broadcast %3 : vector<16x1xf32> to vector<16x256xf32>
    %5 = arith.addf %2, %4 : vector<16x256xf32>
    %6 = math.tanh %5 : vector<16x256xf32>
    %cst_5 = arith.constant dense<0.000000e+00> : vector<16xf32>
    %7 = vector.multi_reduction <add>, %6, %cst_5 [1] : vector<16x256xf32> to vector<16xf32>
    %8 = vector.shape_cast %7 : vector<16xf32> to vector<16x1xf32>
    %cst_6 = arith.constant 2.560000e+02 : f32
    %9 = vector.broadcast %cst_6 : f32 to vector<16x1xf32>
    %10 = arith.divf %8, %9 : vector<16x1xf32>
    %c0_7 = arith.constant 0 : index
    %c0_8 = arith.constant 0 : index
    %11 = vector.load %arg4[%c0_7, %c0_8] : memref<32x16xf32, #tpu.memory_space<vmem>>, vector<32x16xf32>
    %cst_9 = arith.constant dense<0.000000e+00> : vector<32x1xf32>
    %12 = tpu.matmul %11, %10, %cst_9 {dimension_numbers = #tpu.dot_dimension_numbers<[1], [0], [0], [1], [0, 0, 1, 1], [], []>} : vector<32x16xf32>, vector<16x1xf32>, vector<32x1xf32> -> vector<32x1xf32>
    %c0_10 = arith.constant 0 : index
    %c0_11 = arith.constant 0 : index
    %13 = vector.load %arg5[%c0_10, %c0_11] : memref<32x1xf32, #tpu.memory_space<vmem>>, vector<32x1xf32>
    %14 = arith.addf %12, %13 : vector<32x1xf32>
    %15 = vector.extract_strided_slice %14 {offsets = [0, 0], sizes = [16, 1], strides = [1, 1]} : vector<32x1xf32> to vector<16x1xf32>
    %16 = vector.extract_strided_slice %14 {offsets = [16, 0], sizes = [16, 1], strides = [1, 1]} : vector<32x1xf32> to vector<16x1xf32>
    %17 = math.exp %16 : vector<16x1xf32>
    %c0_12 = arith.constant 0 : index
    %c0_13 = arith.constant 0 : index
    %c0_14 = arith.constant 0 : index
    %18 = vector.load %arg6[%c0_12, %c0_13, %c0_14] : memref<1x16x1xf32, #tpu.memory_space<vmem>>, vector<1x16x1xf32>
    %19 = vector.shape_cast %18 : vector<1x16x1xf32> to vector<16x1xf32>
    %20 = arith.mulf %17, %19 : vector<16x1xf32>
    %21 = arith.addf %15, %20 : vector<16x1xf32>
    %22 = arith.mulf %17, %17 : vector<16x1xf32>
    %23 = arith.mulf %15, %15 : vector<16x1xf32>
    %24 = arith.addf %22, %23 : vector<16x1xf32>
    %25 = arith.subf %24, %16 : vector<16x1xf32>
    %cst_15 = arith.constant 5.000000e-01 : f32
    %26 = vector.broadcast %cst_15 : f32 to vector<16x1xf32>
    %27 = arith.subf %25, %26 : vector<16x1xf32>
    %cst_16 = arith.constant dense<0.000000e+00> : vector<1xf32>
    %28 = vector.multi_reduction <add>, %27, %cst_16 [0] : vector<16x1xf32> to vector<1xf32>
    %29 = vector.shape_cast %28 : vector<1xf32> to vector<1x1xf32>
    %30 = tpu.concatenate %21, %29 in 0 : vector<16x1xf32>, vector<1x1xf32> -> vector<17x1xf32>
    %c0_17 = arith.constant 0 : index
    %c0_18 = arith.constant 0 : index
    %c0_19 = arith.constant 0 : index
    %31 = vector.load %arg7[%c0_17, %c0_18, %c0_19] : memref<1x17x1xf32, #tpu.memory_space<vmem>>, vector<1x17x1xf32>
    %32 = vector.shape_cast %31 : vector<1x17x1xf32> to vector<17x1xf32>
    %33 = vector.shape_cast %30 : vector<17x1xf32> to vector<1x17x1xf32>
    tpu.vector_store %arg7[%c0_17, %c0_18, %c0_19], %33 {strides = array<i32>} : memref<1x17x1xf32, #tpu.memory_space<vmem>>, vector<1x17x1xf32>,
    return
  }
  func.func @transform_0(%arg0: i32) -> (i32, i32) {
    %c0_i32 = arith.constant 0 : i32
    %c0_i32_0 = arith.constant 0 : i32
    return %c0_i32, %arg0 : i32, i32
  }
  func.func @transform_1(%arg0: i32) -> (i32, i32) {
    %c0_i32 = arith.constant 0 : i32
    %c0_i32_0 = arith.constant 0 : i32
    %c0_i32_1 = arith.constant 0 : i32
    return %c0_i32, %c0_i32_0 : i32, i32
  }
  func.func @transform_2(%arg0: i32) -> (i32, i32) {
    %c0_i32 = arith.constant 0 : i32
    %c0_i32_0 = arith.constant 0 : i32
    %c0_i32_1 = arith.constant 0 : i32
    return %c0_i32, %c0_i32_0 : i32, i32
  }
  func.func @transform_3(%arg0: i32) -> (i32, i32) {
    %c0_i32 = arith.constant 0 : i32
    %c0_i32_0 = arith.constant 0 : i32
    %c0_i32_1 = arith.constant 0 : i32
    return %c0_i32, %c0_i32_0 : i32, i32
  }
  func.func @transform_4(%arg0: i32) -> (i32, i32) {
    %c0_i32 = arith.constant 0 : i32
    %c0_i32_0 = arith.constant 0 : i32
    %c0_i32_1 = arith.constant 0 : i32
    return %c0_i32, %c0_i32_0 : i32, i32
  }
  func.func @transform_5(%arg0: i32) -> (i32, i32, i32) {
    %c0_i32 = arith.constant 0 : i32
    %c0_i32_0 = arith.constant 0 : i32
    %c0_i32_1 = arith.constant 0 : i32
    return %arg0, %c0_i32, %c0_i32_0 : i32, i32, i32
  }
  func.func @transform_6(%arg0: i32) -> (i32, i32, i32) {
    %c0_i32 = arith.constant 0 : i32
    %c0_i32_0 = arith.constant 0 : i32
    %c0_i32_1 = arith.constant 0 : i32
    return %arg0, %c0_i32, %c0_i32_0 : i32, i32, i32
  }
}

</mosaic_0001>

<bundles_post_ra>
// kernel: tpu_custom_call.1
= control target key start
LH: loop header
LB: loop body
LE: loop exit
PB: predicated region body
PF: predicated region fallthrough
CT: control target
= control target key end

     0   :  { %11 = vsyncpa [#allocation4], 0  ;;  %s869_s21 = smov 0   ;;  %s871_s22 = smov 0   ;;  %s997_s0 = inlined_call_operand.vmem [shape: f32[32,512], index: 0, kind: input, shape index: {}]   ;;  %s998_s1 = inlined_call_operand.hbm [shape: f32[16,32], index: 1, kind: input, shape index: {}]   ;;  %s999_s2 = inlined_call_operand.vmem [shape: f32[16,1], index: 2, kind: input, shape index: {}]   ;;  %s1000_s3 = inlined_call_operand.vmem [shape: f32[32,16], index: 3, kind: input, shape index: {}]   ;;  %s1001_s4 = inlined_call_operand.vmem [shape: f32[32,1], index: 4, kind: input, shape index: {}]   ;;  %s1002_s5 = inlined_call_operand.vmem [shape: f32[2,16,1], index: 5, kind: input, shape index: {}]   ;;  %s1003_s6 = inlined_call_operand.vmem [shape: f32[2,17,1], index: 6, kind: output, shape index: {}]  }
   0x1   :  { %s873_s23 = smov 0  }
   0x2 LB: > { %s885_s24 = sadd.s32 4294967295, %s827_s23   ;;  %s888_s25 = sadd.s32 1, %s827_s23   ;;  %s827_s23 = sphi %s873_s23, %s1015_s23   ;;  %s823_s22 = sphi %s871_s22, %s1014_s22   ;;  %s819_s21 = sphi %s869_s21, %s1013_s21  }
   0x3   : > { %s21_s26 = ssub.s32 %s827_s23, %s888_s25  ;;  %s24_s27 = sadd.s32 1, %s823_s22 }
   0x4   : > { %p22_p0 = scmp.eq.s32.totalorder %s21_s26, 0  ;;  %p31_p1 = scmp.ne.s32.totalorder %s823_s22, %s819_s21 }
   0x5   : > { %p32_p2 = scmp.eq.s32.totalorder %s827_s23, 0  ;;  %p668_p3 = scmp.ge.s32.totalorder %s827_s23, 1 }
   0x6   : > { %s898_s28 = scalar_select %p22_p0, %s823_s22, %s24_s27  }
   0x7   : > { %p900_p4 = por %p32_p2, %p31_p1  ;;  %p184_p5 = scmp.lt.s32.totalorder %s827_s23, 3 }
   0x8   : > { %p1004_p6 = scmp.eq.s32.totalorder %s885_s24, 0  ;;  %s829_s7 = smov [#allocation3]  }
   0x9   : > { %s1006_s29 = scalar_select %p900_p4, 1, 0 }
   0xa   : > { %p906_p7 = pnand %p668_p3, %p184_p5  ;;  %s196_s8 = sshll.u32 %s829_s7, 4  ;;  %s197_s8 = int_to_ptr.vmem [resolvable:$true] %s196_s8 }
   0xb   : > { %s773_s12 = scalar_lea.hbm %s998_s1, 256 }
   0xc   : > { %s1007_s30 = scalar_select %p906_p7, 1, 0 }
   0xd   : > { %p725_p8 = pneg %p906_p7  ;;  %p774_p10 = scmp.ne.s32.totalorder %s998_s1, %s773_s12 }
   0xe   : > { %p780_p0 = scmp.lt.u32.totalorder %s773_s12, %s998_s1 }
   0xf   : > { %p914_p9 = pnand %p1004_p6, %p725_p8 }
  0x11   : > { %p775_p11 = pneg %p914_p9 }
  0x13   : > { %p776_p12 = pnand %p775_p11, %p774_p10 }
  0x15   : > { %p777_p13 = pneg %p776_p12 }
  0x17   : > { %p782_p1 = pnand %p780_p0, %p777_p13 }
  0x19   : > { %785 = shalt.err (!%p782_p1)
}
  0x1a   : > { %s786_s17 = scalar_lea.vmem %s197_s8, 256  ;;  %p794_p8 = scmp.lt.s32.totalorder %s197_s8, %s197_s8 }
  0x1b   : > { %p787_p2 = scmp.ne.s32.totalorder %s197_s8, %s786_s17  ;;  %p795_p6 = scmp.lt.s32.totalorder %s786_s17, %s786_s17 }
  0x1d   : > { %p789_p3 = pnand %p787_p2, %p775_p11  ;;  %p796_p7 = por %p795_p6, %p794_p8 }
  0x1f   : > { %p790_p5 = pneg %p789_p3 }
  0x21   : > { %p797_p4 = pnand %p796_p7, %p790_p5 }
  0x23   : > { %800 = shalt.err (!%p797_p4)
}
  0x24   : > { %s830_s18 = smov 128   ;;  %s831_s19 = smov 8  }
  0x25   : > { %728 = dma.hbm_to_vmem [thread:$0]  (!%p914_p9), %s998_s1, 256, %s197_s8, [#allocation4], %s830_s18, %s830_s18, %s831_s19  }
  0x26   : > { %p670_p10 = scmp.ge.s32.totalorder %s827_s23, 2 }
  0x27   : > { %p1009_p12 = scmp.ne.s32.totalorder (!%p670_p10), %s1006_s29, 0 }
  0x28   : > { %215 = sbr.rel (%p670_p10) target bundleno = 55 (0x37), region = 32 }
  0x2f   : > { %218 = sbr.rel (!%p1009_p12) target bundleno = 55 (0x37), region = 36  ;;  %s220_s27 = sand.u32 (%p1009_p12), 1, %s823_s22  }
  0x30   : > { %s690_s7 = sshll.u32 (%p1009_p12), %s827_s23, 4  ;;  %s671_s10 = sshll.u32 (%p1009_p12), %s220_s27, 6 }
  0x31   : > { %s225_s13 = scalar_lea.vmem (%p1009_p12), %s997_s0, %s690_s7  ;;  %s222_s9 = scalar_lea.vmem (%p1009_p12), [#allocation2], %s671_s10 }
  0x32   : > { %v238_v0 = vld [vmem:[%s225_s13] sm:$0xff] (%p1009_p12)  ;;  %v240_v1 = vld [vmem:[%s225_s13 + $0x8] sm:$0xff] (%p1009_p12) }
  0x33   : > { %v242_v2 = vld [vmem:[%s225_s13 + $0x20] sm:$0xff] (%p1009_p12)  ;;  %239 = vst [vmem:[%s222_s9] sm:$0xff] (%p1009_p12), %v238_v0  ;;  %241 = vst [vmem:[%s222_s9 + $0x8] sm:$0xff] (%p1009_p12), %v240_v1  ;;  %v244_v3 = vld [vmem:[%s225_s13 + $0x28] sm:$0xff] (%p1009_p12) }
  0x34   : > { %243 = vst [vmem:[%s222_s9 + $0x10] sm:$0xff] (%p1009_p12), %v242_v2  ;;  %v246_v4 = vld [vmem:[%s225_s13 + $0x40] sm:$0xff] (%p1009_p12)  ;;  %v248_v5 = vld [vmem:[%s225_s13 + $0x48] sm:$0xff] (%p1009_p12)  ;;  %245 = vst [vmem:[%s222_s9 + $0x18] sm:$0xff] (%p1009_p12), %v244_v3 }
  0x35   : > { %247 = vst [vmem:[%s222_s9 + $0x20] sm:$0xff] (%p1009_p12), %v246_v4  ;;  %249 = vst [vmem:[%s222_s9 + $0x28] sm:$0xff] (%p1009_p12), %v248_v5  ;;  %v250_v6 = vld [vmem:[%s225_s13 + $0x60] sm:$0xff] (%p1009_p12)  ;;  %v252_v7 = vld [vmem:[%s225_s13 + $0x68] sm:$0xff] (%p1009_p12) }
  0x36   : > { %251 = vst [vmem:[%s222_s9 + $0x30] sm:$0xff] %v250_v6  ;;  %253 = vst [vmem:[%s222_s9 + $0x38] sm:$0xff] %v252_v7 }
  0x37 PF: > { %p1010_p4 = scmp.ne.s32.totalorder %s1007_s30, 0 }
  0x38   : > { %s273_s23 = sand.u32 (!%p1010_p4), 1, %s819_s21   ;;  %p1011_p6 = scmp.eq.s32.totalorder (!%p1010_p4), %s885_s24, 0 }
  0x39   : > { %270 = sbr.rel (%p1010_p4) target bundleno = 714 (0x2ca), region = 63  ;;  %s675_s29 = sshll.u32 (!%p1010_p4), %s273_s23, 6 }
  0x3a   : > { %s275_s8 = scalar_lea.vmem (!%p1010_p4), [#allocation2], %s675_s29 }
  0x40   : > { %814 = dma.done.wait (%p1011_p6), [#allocation4], 256   ;;  %p1012_p7 = pmov %p1011_p6 }
  0x41   : > { %v832_v8 = vmov 0.0   ;;  %v833_v9 = vmov 0   ;;  %v325_v10 = vld [vmem:[%s275_s8 + $0x8] sm:$0xff]  ;;  %v327_v11 = vld [vmem:[%s275_s8 + $0x18] sm:$0xff]  ;;  %v324_v12 = vld [vmem:[%s275_s8] sm:$0xff]  ;;  %vm344_vm0 = vcmask 261120  }
  0x42   : > { %816 = vsyncadd (%p1012_p7), [#allocation4], 4294967040  ;;  %415 = vmatprep.mubr.f32.mxu0 %v832_v8  ;;  %760 = vset.pattern.permute.xlu0 %v833_v9  ;;  %v708_v13 = vpack.c.bf16 %v327_v11, %v325_v10  ;;  %v326_v14 = vld [vmem:[%s275_s8 + $0x10] sm:$0xff]  ;;  %v329_v15 = vld [vmem:[%s275_s8 + $0x28] sm:$0xff]  ;;  %vm449_vm1 = vcmask 130048   ;;  %p312_p9 = scmp.lt.s32.totalorder %s885_s24, 1 }
  0x43   : > { %v331_v16 = vld [vmem:[%s275_s8 + $0x38] sm:$0xff]  ;;  %v710_v17 = vpack.c.bf16 %v326_v14, %v324_v12  ;;  %v328_v19 = vld [vmem:[%s275_s8 + $0x20] sm:$0xff]  ;;  %v330_v20 = vld [vmem:[%s275_s8 + $0x30] sm:$0xff]  ;;  %vm567_vm2 = vcmask 7168   ;;  %vm579_vm3 = vcmask 0  }
  0x44   : > { %v712_v18 = vpack.c.bf16 %v331_v16, %v329_v15  ;;  %709 = vmatprep.subr.bf16.mxu0 %v708_v13  ;;  %v332_v21 = vld [vmem:[%s999_s2] sm:$0xff]  ;;  %v714_v22 = vpack.c.bf16 %v330_v20, %v328_v19  ;;  %v333_v23 = vld [vmem:[%s999_s2 + $0x8] sm:$0xff]  ;;  %v443_v49 = vld [vmem:[%s1000_s3 + $0x10] sm:$0xff]  ;;  %s1017_s24 = smov (!%p312_p9, %s885_s24), 1 }
  0x45   : > { %711 = vmatpush1.bf16.msra.mxu0 %v710_v17  ;;  %336 = vperm.xlu0 %760, %v332_v21   ;;  %v322_v24 = vld [vmem:[#allocation3] sm:$0xff]  ;;  %v323_v25 = vld [vmem:[#allocation3 + $0x8] sm:$0xff]  ;;  %v444_v50 = vld [vmem:[%s1000_s3 + $0x18] sm:$0xff]  ;;  %s691_s9 = sshll.u32 %s1017_s24, 4  ;;  %s720_s16 = smul.u32 24, %s1017_s24 }
  0x46   : > { %713 = vmatprep.subr.bf16.mxu0 %v712_v18  ;;  %v441_v42 = vld [vmem:[%s1000_s3] sm:$0xff]  ;;  %v442_v48 = vld [vmem:[%s1000_s3 + $0x8] sm:$0xff]  ;;  %v448_v53 = vld [vmem:[%s1001_s4 + $0x18] sm:$0xff]  ;;  %s316_s15 = scalar_lea.vmem %s1002_s5, %s691_s9 }
  0x47   : > { %702 = vmatprep.mubr.msk.f32.mxu1 %vm449_vm1, %v441_v42  ;;  %v447_v54 = vld [vmem:[%s1001_s4 + $0x10] sm:$0xff]  ;;  %v446_v61 = vld [vmem:[%s1001_s4 + $0x8] sm:$0xff]  ;;  %v445_v62 = vld [vmem:[%s1001_s4] sm:$0xff]  ;;  %s321_s19 = scalar_lea.vmem %s1003_s6, %s720_s16 }
  0x48   : > { %v552_v1 = vld [vmem:[%s316_s15 + $0x8] sm:$0xff]  ;;  %v551_v2 = vld [vmem:[%s316_s15] sm:$0xff] }
  0x49   : > { %715 = vmatpush1.bf16.msra.mxu0 %v714_v22  ;;  %341 = vperm.xlu0 %760, %v333_v23  }
  0x4c   : > { %680 = vmatmul.mubr.msk.f32.vlgmr.msra.gmra.mrb[0].mxu0 %vm344_vm0, %v322_v24 }
  0x4d   : > { %421 = vmatprep.mubr.f32.mxu0 %v832_v8 }
  0x50   : > { %681 = vmatmul.mubr.msk.f32.gmra.mrb[2].mxu0 %vm344_vm0, %v323_v25 }
  0xc4   : > { %v337_v26 = vpop.permute.xlu0 %336 }
  0xc8   : > { %v342_v31 = vpop.permute.xlu0 %341 }
 0x11f   : > { %v417_v27 = vpop.f32.mrb[0].mxu0 }
 0x120   : > { %v418_v28 = vadd.f32 %v417_v27, %v337_v26  ;;  %v419_v29 = vpop.f32.mrb[1].mxu0 }
 0x121   : > { %v420_v30 = vadd.f32 %v419_v29, %v337_v26 }
 0x122   : > { %761 = vtanh.f32 %v418_v28 }
 0x123   : > { %763 = vtanh.f32 %v420_v30  ;;  %v423_v32 = vpop.f32.mrb[2].mxu0 }
 0x124   : > { %v424_v33 = vadd.f32 %v423_v32, %v342_v31  ;;  %v425_v34 = vpop.f32.mrb[3].mxu0 }
 0x125   : > { %v426_v35 = vadd.f32 %v425_v34, %v342_v31 }
 0x126   : > { %765 = vtanh.f32 %v424_v33 }
 0x127   : > { %767 = vtanh.f32 %v426_v35 }
 0x12c   : > { %v762_v36 = vpop.eup %761 }
 0x12d   : > { %v764_v37 = vpop.eup %763 }
 0x12e   : > { %v432_v38 = vadd.f32 %v764_v37, %v762_v36 }
 0x130   : > { %v766_v39 = vpop.eup %765  ;;  %433 = vadd.xlane.f32.xlu1 %v432_v38 }
 0x131   : > { %v768_v40 = vpop.eup %767 }
 0x132   : > { %v435_v41 = vadd.f32 %v768_v40, %v766_v39 }
 0x134   : > { %436 = vadd.xlane.f32.xlu1 %v435_v41 }
 0x1bd   : > { %v434_v43 = vpop.xlane.xlu1 %433 }
 0x1be   : > { %v439_v45 = vmul.f32 0.00390625, %v434_v43 }
 0x1c1   : > { %v437_v44 = vpop.xlane.xlu1 %436 }
 0x1c2   : > { %v440_v46 = vmul.f32 0.00390625, %v437_v44 }
 0x1c4   : > { %v716_v47 = vpack.c.bf16 %v440_v46, %v439_v45 }
 0x1c6   : > { %717 = vmatprep.subr.bf16.mxu1 %v716_v47 }
 0x1c7   : > { %719 = vmatpush3.bf16.msra.mxu1 %v716_v47 }
 0x1ca   : > { %703 = vmatmul.mubr.msk.f32.vlgmr.msra.gmra.mrb[0].mxu1 %vm449_vm1, %v442_v48 }
 0x1cb   : > { %705 = vmatprep.mubr.msk.f32.mxu1 %vm449_vm1, %v443_v49 }
 0x1ce   : > { %706 = vmatmul.mubr.msk.f32.gmra.mrb[2].mxu1 %vm449_vm1, %v444_v50 }
 0x29d   : > { %v704_v51 = vpop.f32.mrb[0].mxu1 }
 0x29e   : > { %v528_v52 = vpop.f32.mrb[1].mxu1  ;;  %v534_v63 = vadd.f32 %v704_v51, %v446_v61 }
 0x29f   : > { %v529_v0 = vadd.f32 %v528_v52, %v445_v62 }
 0x2a0   : > { %v560_v5 = vmul.f32 %v534_v63, %v534_v63 }
 0x2a1   : > { %v707_v55 = vpop.f32.mrb[2].mxu1  ;;  %v559_v8 = vmul.f32 %v529_v0, %v529_v0 }
 0x2a2   : > { %v544_v56 = vadd.f32 %v707_v55, %v448_v53  ;;  %v538_v57 = vpop.f32.mrb[3].mxu1 }
 0x2a3   : > { %v539_v58 = vadd.f32 %v538_v57, %v447_v54 }
 0x2a4   : > { %v549_v59 = vmul.f32 1.442695, %v544_v56 }
 0x2a5   : > { %v547_v60 = vmul.f32 1.442695, %v539_v58 }
 0x2a6   : > { %769 = vpow2.f32 %v549_v59 }
 0x2a7   : > { %771 = vpow2.f32 %v547_v60 }
 0x2b0   : > { %v770_v3 = vpop.eup %769 }
 0x2b1   : > { %v772_v4 = vpop.eup %771  ;;  %v554_v6 = vmul.f32 %v770_v3, %v552_v1  ;;  %v558_v7 = vmul.f32 %v770_v3, %v770_v3 }
 0x2b2   : > { %v553_v9 = vmul.f32 %v772_v4, %v551_v2  ;;  %v557_v10 = vmul.f32 %v772_v4, %v772_v4 }
 0x2b3   : > { %v556_v11 = vadd.f32 %v554_v6, %v534_v63  ;;  %v562_v12 = vadd.f32 %v560_v5, %v558_v7 }
 0x2b4   : > { %v555_v13 = vadd.f32 %v553_v9, %v529_v0  ;;  %v561_v14 = vadd.f32 %v559_v8, %v557_v10 }
 0x2b5   : > { %v564_v15 = vsub.f32 %v562_v12, %v544_v56  ;;  %578 = vst.msk [vmem:[%s321_s19 + $0x8] sm:$0xff] %vm567_vm2, %v556_v11 }
 0x2b6   : > { %v563_v16 = vsub.f32 %v561_v14, %v539_v58  ;;  %577 = vst.msk [vmem:[%s321_s19] sm:$0xff] %vm567_vm2, %v555_v13 }
 0x2b7   : > { %v687_v17 = vadd.f32 -0.5, %v564_v15 }
 0x2b8   : > { %v686_v18 = vadd.f32 -0.5, %v563_v16 }
 0x2b9   : > { %v569_v19 = vsel %vm567_vm2, %v687_v17, 0.0 }
 0x2ba   : > { %v568_v20 = vsel %vm567_vm2, %v686_v18, 0.0 }
 0x2bb   : > { %v570_v21 = vadd.f32 %v569_v19, %v568_v20 }
 0x2bd   : > { %v571_v22 = vrot.slane %v570_v21, 4 }
 0x2bf   : > { %v572_v23 = vadd.f32 %v571_v22, %v570_v21 }
 0x2c1   : > { %v573_v24 = vrot.slane %v572_v23, 2 }
 0x2c3   : > { %v574_v25 = vadd.f32 %v573_v24, %v572_v23 }
 0x2c5   : > { %v575_v26 = vrot.slane %v574_v25, 1 }
 0x2c7   : > { %v576_v27 = vadd.f32 %v575_v26, %v574_v25 }
 0x2c9   : > { %580 = vst.msk [vmem:[%s321_s19 + $0x10] sm:$0x1] %vm579_vm3, %v576_v27 }
 0x2ca PF: > { %p14_p11 = scmp.ge.s32.totalorder %s888_s25, 4   ;;  %s1013_s21 = smov %s823_s22 }
 0x2cb   : > { %s1014_s22 = smov %s898_s28  ;;  %s1015_s23 = smov %s888_s25 }
 0x2cc   :  { %16 = sbr.rel (!%p14_p11) target bundleno = 2 (0x2), region = 110 }
 0x2d3   :  { %602 = vsyncpa [#allocation4], 1 }
 0x2d4   :  { %604 = vsyncpa [#allocation4 + $0x1], 1 }

</bundles_post_ra>
